<compile_context>
chip_gen: v7x
topology: tpu7x:2x2x1
jax: 0.10.0
libtpu: 0.0.40
codegen_flags: <defaults>
</compile_context>

<pallas_src>
import jax
import jax.numpy as jnp
from jax.experimental import pallas as pl
from jax.experimental.pallas import tpu as pltpu

# TODO(synk): ResNet-50 / RoBERTa backbones (pretrained checkpoints) are not
# reproduced here; the kernel consumes the backbone embedding directly.

BN_EPS = 1e-5
LANE = 128


# ----------------------------------------------------------------------------
# Kernel
# ----------------------------------------------------------------------------
def _head_kernel(emb_ref, w1_ref, gamma_ref, beta_ref, w2_ref, b2_ref, out_ref):
    j = pl.program_id(0)

    @pl.when(j == 0)
    def _init():
        # Seed the output accumulator with the classifier bias (runs once).
        out_ref[...] = jnp.broadcast_to(b2_ref[...], out_ref.shape)

    # fc: [B, dim_p] @ [dim_p, tile_d]  (bf16 inputs, f32 MXU accumulation).
    # The fc bias b1 is omitted: it cancels under training-mode BN.
    h = jnp.dot(emb_ref[...], w1_ref[...], preferred_element_type=jnp.float32)

    # BatchNorm1d (training mode): one-pass per-feature stats in f32.
    #   var = E[h^2] - mean^2  (clamped to >= 0 against cancellation)
    #   hn  = h * scale + offset,  scale = gamma * rsqrt(var+eps),
    #                              offset = beta - mean * scale
    mean = jnp.mean(h, axis=0, keepdims=True)
    mean_sq = jnp.mean(h * h, axis=0, keepdims=True)
    var = jnp.maximum(mean_sq - mean * mean, 0.0)
    scale = jax.lax.rsqrt(var + BN_EPS) * gamma_ref[...]
    offset = beta_ref[...] - mean * scale
    hn = h * scale + offset

    # ReLU
    hr = jnp.maximum(hn, 0.0)

    # Classifier: accumulate this D-tile's contribution into the lane-padded
    # output block (bf16 inputs, f32 accumulation).
    out_ref[...] += jnp.dot(hr.astype(jnp.bfloat16), w2_ref[...],
                            preferred_element_type=jnp.float32)


# ----------------------------------------------------------------------------
# Wrapper helpers
# ----------------------------------------------------------------------------
def _round_up(x, m):
    return (x + m - 1) // m * m


def _pad2d(x, rows, cols):
    return jnp.pad(x, ((0, rows - x.shape[0]), (0, cols - x.shape[1])))


def _vmem_limit_bytes():
    """Per-chip scoped-VMEM limit: ~3/4 of physical, clamped to [32, 96] MiB."""
    cap = 128 * 1024 * 1024
    try:
        cap = int(pltpu.get_tpu_info().vmem_capacity_bytes)
    except Exception:
        pass
    return max(32 * 1024 * 1024, min((cap * 3) // 4, 96 * 1024 * 1024))


def _auto_tile_d(dim_p, D):
    """Collapse the grid when w1 fits; otherwise tile D at 512 (>=256 for MXU)."""
    d_lane = _round_up(D, LANE)
    # 2 pipeline buffers of a bf16 w1 tile; keep well under the scoped limit
    # on every generation (including v7x's 64 MiB physical VMEM).
    if dim_p * d_lane * 2 * 2 <= 24 * 1024 * 1024:
        return d_lane          # single grid step: whole head in one fused pass
    return 512


def prepare_head_params(w1, b1, gamma, beta, w2, b2, *, tile_d=None):
    """Pad + cast the static weights ONCE (hoisted out of the per-call path).

    b1 is accepted for interface parity with the PyTorch module but is not
    used by the kernel: a constant pre-BN bias is cancelled by the batch-mean
    subtraction under training-mode BatchNorm.  (If BN is ever switched to
    eval-mode running statistics, b1 becomes live again and must be restored.)
    """
    del b1  # mathematically a no-op under training-mode BatchNorm
    dim, D = w1.shape
    n_out = w2.shape[1]

    dim_p = _round_up(dim, LANE)
    if tile_d is None:
        tile_d = _auto_tile_d(dim_p, D)
    assert tile_d % LANE == 0
    d_p = _round_up(D, tile_d)
    n_p = _round_up(n_out, LANE)

    return {
        "w1": _pad2d(w1, dim_p, d_p).astype(jnp.bfloat16),
        "gamma": _pad2d(gamma.reshape(1, -1), 1, d_p),   # padded features -> 0
        "beta": _pad2d(beta.reshape(1, -1), 1, d_p),     # padded features -> 0
        "w2": _pad2d(w2, d_p, n_p).astype(jnp.bfloat16),
        "b2": _pad2d(b2.reshape(1, -1), 1, n_p),
        "dim": dim, "dim_p": dim_p, "d_p": d_p,
        "n_out": n_out, "n_p": n_p, "tile_d": tile_d,
    }


def single_head_prepared(emb, prep):
    """emb: [B, dim] f32, prep: output of prepare_head_params -> [B, n_out] f32."""
    B, dim = emb.shape
    assert dim == prep["dim"]
    dim_p, d_p, n_p, tile_d = prep["dim_p"], prep["d_p"], prep["n_p"], prep["tile_d"]

    # Per-call layout plumbing for the activation only (it changes every call).
    emb_p = _pad2d(emb, B, dim_p).astype(jnp.bfloat16)

    grid = (d_p // tile_d,)

    out = pl.pallas_call(
        _head_kernel,
        out_shape=jax.ShapeDtypeStruct((B, n_p), jnp.float32),
        grid_spec=pltpu.PrefetchScalarGridSpec(
            num_scalar_prefetch=0,
            grid=grid,
            in_specs=[
                pl.BlockSpec((B, dim_p), lambda j: (0, 0)),       # emb (resident)
                pl.BlockSpec((dim_p, tile_d), lambda j: (0, j)),  # w1 column tile
                pl.BlockSpec((1, tile_d), lambda j: (0, j)),      # gamma tile
                pl.BlockSpec((1, tile_d), lambda j: (0, j)),      # beta tile
                pl.BlockSpec((tile_d, n_p), lambda j: (j, 0)),    # w2 row tile
                pl.BlockSpec((1, n_p), lambda j: (0, 0)),         # b2 (resident)
            ],
            out_specs=pl.BlockSpec((B, n_p), lambda j: (0, 0)),   # accumulator
        ),
        compiler_params=pltpu.CompilerParams(
            # The D-tile axis feeds an output reduction (second matmul sums
            # over D), so it must be "arbitrary"; "parallel" would be wrong.
            dimension_semantics=("arbitrary",),
            vmem_limit_bytes=_vmem_limit_bytes(),
        ),
    )(emb_p, prep["w1"], prep["gamma"], prep["beta"], prep["w2"], prep["b2"])

    # Lane-dense kernel output; slice the real classes outside the kernel.
    return out[:, :prep["n_out"]]


def single_head(emb, w1, b1, gamma, beta, w2, b2, *, tile_d=None):
    """Convenience one-shot path (prep not hoisted).  Prefer prepare+prepared."""
    return single_head_prepared(emb, prepare_head_params(
        w1, b1, gamma, beta, w2, b2, tile_d=tile_d))


# ----------------------------------------------------------------------------
# Reference + self-test
# ----------------------------------------------------------------------------
def make_params(key, dim, D, n_out=3):
    k1, k2, k3, k4 = jax.random.split(key, 4)
    # Deterministic, PyTorch-Linear-like uniform init.
    w1 = jax.random.uniform(k1, (dim, D), jnp.float32,
                            -1.0 / jnp.sqrt(dim), 1.0 / jnp.sqrt(dim))
    b1 = jax.random.uniform(k2, (1, D), jnp.float32,
                            -1.0 / jnp.sqrt(dim), 1.0 / jnp.sqrt(dim))
    gamma = jnp.ones((1, D), jnp.float32)     # BatchNorm1d weight init
    beta = jnp.zeros((1, D), jnp.float32)     # BatchNorm1d bias init
    w2 = jax.random.uniform(k3, (D, n_out), jnp.float32,
                            -1.0 / jnp.sqrt(D), 1.0 / jnp.sqrt(D))
    b2 = jax.random.uniform(k4, (1, n_out), jnp.float32,
                            -1.0 / jnp.sqrt(D), 1.0 / jnp.sqrt(D))
    return w1, b1, gamma, beta, w2, b2


def reference_head(emb, w1, b1, gamma, beta, w2, b2):
    # Pure-f32 PyTorch-semantics reference (b1 included; it cancels under BN).
    h = emb @ w1 + b1
    mean = h.mean(axis=0, keepdims=True)
    var = ((h - mean) ** 2).mean(axis=0, keepdims=True)
    hn = (h - mean) / jnp.sqrt(var + BN_EPS) * gamma + beta
    return jnp.maximum(hn, 0.0) @ w2 + b2


if __name__ == "__main__":
    B, dim, D = 8, 32, 64
    key = jax.random.PRNGKey(0)
    k_emb, k_par = jax.random.split(key)

    # Stand-in for the backbone embedding (resnet pool / roberta pooler output).
    emb = jax.random.normal(k_emb, (B, dim), jnp.float32)
    params = make_params(k_par, dim, D)

    # Hoisted weight preparation (pad + bf16 cast once), then run the kernel.
    prep = prepare_head_params(*params)
    out = single_head_prepared(emb, prep)
    out = jax.block_until_ready(out)

    ref = reference_head(emb, *params)
    assert out.shape == (B, 3)
    # Loose tolerance: kernel feeds bf16 inputs to the MXU (f32 accumulation),
    # the reference is pure f32.
    assert jnp.allclose(out, ref, atol=5e-2, rtol=5e-2), "mismatch vs reference"

    print("KERNEL_OK")
</pallas_src>

<mosaic_0001>
module attributes {stable_mosaic.version = 11 : i64} {
  func.func @_head_kernel(%arg0: i32, %arg1: memref<8x128xbf16, #tpu.memory_space<vmem>>, %arg2: memref<128x128xbf16, #tpu.memory_space<vmem>>, %arg3: memref<1x128xf32, #tpu.memory_space<vmem>>, %arg4: memref<1x128xf32, #tpu.memory_space<vmem>>, %arg5: memref<128x128xbf16, #tpu.memory_space<vmem>>, %arg6: memref<1x128xf32, #tpu.memory_space<vmem>>, %arg7: memref<8x128xf32, #tpu.memory_space<vmem>>) attributes {dimension_semantics = [#tpu.dimension_semantics<arbitrary>], iteration_bounds = array<i64: 1>, scalar_prefetch = 0 : i64, scratch_operands = 0 : i64, tpu.core_type = #tpu.core_type<tc>, window_params = [{pipeline_mode = #tpu.pipeline_mode<synchronous>, transform_indices = @transform_0, window_bounds = array<i64: 8, 128>}, {transform_indices = @transform_1, window_bounds = array<i64: 128, 128>}, {transform_indices = @transform_2, window_bounds = array<i64: 1, 128>}, {transform_indices = @transform_3, window_bounds = array<i64: 1, 128>}, {transform_indices = @transform_4, window_bounds = array<i64: 128, 128>}, {pipeline_mode = #tpu.pipeline_mode<synchronous>, transform_indices = @transform_5, window_bounds = array<i64: 1, 128>}, {pipeline_mode = #tpu.pipeline_mode<synchronous>, transform_indices = @transform_6, window_bounds = array<i64: 8, 128>}]} {
    %c0_i32 = arith.constant 0 : i32
    %0 = arith.cmpi eq, %arg0, %c0_i32 : i32
    %1 = arith.extui %0 : i1 to i32
    %c0_i32_0 = arith.constant 0 : i32
    %2 = arith.cmpi ne, %1, %c0_i32_0 : i32
    scf.if %2 {
      %c0_22 = arith.constant 0 : index
      %c0_23 = arith.constant 0 : index
      %39 = vector.load %arg6[%c0_22, %c0_23] : memref<1x128xf32, #tpu.memory_space<vmem>>, vector<1x128xf32>
      %40 = vector.shape_cast %39 : vector<1x128xf32> to vector<1x128xf32>
      %41 = vector.broadcast %40 : vector<1x128xf32> to vector<8x128xf32>
      %c0_24 = arith.constant 0 : index
      %c0_25 = arith.constant 0 : index
      %42 = vector.load %arg7[%c0_24, %c0_25] : memref<8x128xf32, #tpu.memory_space<vmem>>, vector<8x128xf32>
      tpu.vector_store %arg7[%c0_24, %c0_25], %41 {strides = array<i32>} : memref<8x128xf32, #tpu.memory_space<vmem>>, vector<8x128xf32>,
    } else {
    }
    %c0 = arith.constant 0 : index
    %c0_1 = arith.constant 0 : index
    %3 = vector.load %arg1[%c0, %c0_1] : memref<8x128xbf16, #tpu.memory_space<vmem>>, vector<8x128xbf16>
    %c0_2 = arith.constant 0 : index
    %c0_3 = arith.constant 0 : index
    %4 = vector.load %arg2[%c0_2, %c0_3] : memref<128x128xbf16, #tpu.memory_space<vmem>>, vector<128x128xbf16>
    %cst = arith.constant dense<0.000000e+00> : vector<8x128xf32>
    %5 = tpu.matmul %3, %4, %cst {dimension_numbers = #tpu.dot_dimension_numbers<[1], [0], [0], [1], [0, 0, 1, 1], [], []>} : vector<8x128xbf16>, vector<128x128xbf16>, vector<8x128xf32> -> vector<8x128xf32>
    %cst_4 = arith.constant dense<0.000000e+00> : vector<128xf32>
    %6 = vector.multi_reduction <add>, %5, %cst_4 [0] : vector<8x128xf32> to vector<128xf32>
    %7 = vector.shape_cast %6 : vector<128xf32> to vector<1x128xf32>
    %cst_5 = arith.constant 8.000000e+00 : f32
    %8 = vector.broadcast %cst_5 : f32 to vector<1x128xf32>
    %9 = arith.divf %7, %8 : vector<1x128xf32>
    %10 = arith.mulf %5, %5 : vector<8x128xf32>
    %cst_6 = arith.constant dense<0.000000e+00> : vector<128xf32>
    %11 = vector.multi_reduction <add>, %10, %cst_6 [0] : vector<8x128xf32> to vector<128xf32>
    %12 = vector.shape_cast %11 : vector<128xf32> to vector<1x128xf32>
    %cst_7 = arith.constant 8.000000e+00 : f32
    %13 = vector.broadcast %cst_7 : f32 to vector<1x128xf32>
    %14 = arith.divf %12, %13 : vector<1x128xf32>
    %15 = arith.mulf %9, %9 : vector<1x128xf32>
    %16 = arith.subf %14, %15 : vector<1x128xf32>
    %cst_8 = arith.constant 0.000000e+00 : f32
    %17 = vector.broadcast %cst_8 : f32 to vector<1x128xf32>
    %18 = arith.maximumf %16, %17 : vector<1x128xf32>
    %cst_9 = arith.constant 9.99999974E-6 : f32
    %19 = vector.broadcast %cst_9 : f32 to vector<1x128xf32>
    %20 = arith.addf %18, %19 : vector<1x128xf32>
    %21 = math.rsqrt %20 : vector<1x128xf32>
    %c0_10 = arith.constant 0 : index
    %c0_11 = arith.constant 0 : index
    %22 = vector.load %arg3[%c0_10, %c0_11] : memref<1x128xf32, #tpu.memory_space<vmem>>, vector<1x128xf32>
    %23 = arith.mulf %21, %22 : vector<1x128xf32>
    %c0_12 = arith.constant 0 : index
    %c0_13 = arith.constant 0 : index
    %24 = vector.load %arg4[%c0_12, %c0_13] : memref<1x128xf32, #tpu.memory_space<vmem>>, vector<1x128xf32>
    %25 = arith.mulf %9, %23 : vector<1x128xf32>
    %26 = arith.subf %24, %25 : vector<1x128xf32>
    %27 = vector.broadcast %23 : vector<1x128xf32> to vector<8x128xf32>
    %28 = arith.mulf %5, %27 : vector<8x128xf32>
    %29 = vector.broadcast %26 : vector<1x128xf32> to vector<8x128xf32>
    %30 = arith.addf %28, %29 : vector<8x128xf32>
    %cst_14 = arith.constant 0.000000e+00 : f32
    %31 = vector.broadcast %cst_14 : f32 to vector<8x128xf32>
    %32 = arith.maximumf %30, %31 : vector<8x128xf32>
    %c0_15 = arith.constant 0 : index
    %c0_16 = arith.constant 0 : index
    %33 = vector.load %arg7[%c0_15, %c0_16] : memref<8x128xf32, #tpu.memory_space<vmem>>, vector<8x128xf32>
    %34 = arith.truncf %32 : vector<8x128xf32> to vector<8x128xbf16>
    %c0_17 = arith.constant 0 : index
    %c0_18 = arith.constant 0 : index
    %35 = vector.load %arg5[%c0_17, %c0_18] : memref<128x128xbf16, #tpu.memory_space<vmem>>, vector<128x128xbf16>
    %cst_19 = arith.constant dense<0.000000e+00> : vector<8x128xf32>
    %36 = tpu.matmul %34, %35, %cst_19 {dimension_numbers = #tpu.dot_dimension_numbers<[1], [0], [0], [1], [0, 0, 1, 1], [], []>} : vector<8x128xbf16>, vector<128x128xbf16>, vector<8x128xf32> -> vector<8x128xf32>
    %37 = arith.addf %33, %36 : vector<8x128xf32>
    %c0_20 = arith.constant 0 : index
    %c0_21 = arith.constant 0 : index
    %38 = vector.load %arg7[%c0_20, %c0_21] : memref<8x128xf32, #tpu.memory_space<vmem>>, vector<8x128xf32>
    tpu.vector_store %arg7[%c0_20, %c0_21], %37 {strides = array<i32>} : memref<8x128xf32, #tpu.memory_space<vmem>>, vector<8x128xf32>,
    return
  }
  func.func @transform_0(%arg0: i32) -> (i32, i32) {
    %c0_i32 = arith.constant 0 : i32
    %c0_i32_0 = arith.constant 0 : i32
    %c0_i32_1 = arith.constant 0 : i32
    return %c0_i32, %c0_i32_0 : i32, i32
  }
  func.func @transform_1(%arg0: i32) -> (i32, i32) {
    %c0_i32 = arith.constant 0 : i32
    %c0_i32_0 = arith.constant 0 : i32
    return %c0_i32, %arg0 : i32, i32
  }
  func.func @transform_2(%arg0: i32) -> (i32, i32) {
    %c0_i32 = arith.constant 0 : i32
    %c0_i32_0 = arith.constant 0 : i32
    return %c0_i32, %arg0 : i32, i32
  }
  func.func @transform_3(%arg0: i32) -> (i32, i32) {
    %c0_i32 = arith.constant 0 : i32
    %c0_i32_0 = arith.constant 0 : i32
    return %c0_i32, %arg0 : i32, i32
  }
  func.func @transform_4(%arg0: i32) -> (i32, i32) {
    %c0_i32 = arith.constant 0 : i32
    %c0_i32_0 = arith.constant 0 : i32
    return %arg0, %c0_i32 : i32, i32
  }
  func.func @transform_5(%arg0: i32) -> (i32, i32) {
    %c0_i32 = arith.constant 0 : i32
    %c0_i32_0 = arith.constant 0 : i32
    %c0_i32_1 = arith.constant 0 : i32
    return %c0_i32, %c0_i32_0 : i32, i32
  }
  func.func @transform_6(%arg0: i32) -> (i32, i32) {
    %c0_i32 = arith.constant 0 : i32
    %c0_i32_0 = arith.constant 0 : i32
    %c0_i32_1 = arith.constant 0 : i32
    return %c0_i32, %c0_i32_0 : i32, i32
  }
}

</mosaic_0001>

<bundles_post_ra>
// kernel: tpu_custom_call.1
= control target key start
LH: loop header
LB: loop body
LE: loop exit
PB: predicated region body
PF: predicated region fallthrough
CT: control target
= control target key end

     0   :  { %11 = vsyncpa [#allocation3], 0  ;;  %s785_s0 = inlined_call_operand.hbm [shape: bf16[8,128], index: 0, kind: input, shape index: {}]   ;;  %s786_s1 = inlined_call_operand.hbm [shape: bf16[128,128], index: 1, kind: input, shape index: {}]   ;;  %s787_s2 = inlined_call_operand.hbm [shape: f32[1,128], index: 2, kind: input, shape index: {}]   ;;  %s788_s3 = inlined_call_operand.hbm [shape: f32[1,128], index: 3, kind: input, shape index: {}]   ;;  %s789_s4 = inlined_call_operand.hbm [shape: bf16[128,128], index: 4, kind: input, shape index: {}]   ;;  %s790_s5 = inlined_call_operand.hbm [shape: f32[1,128], index: 5, kind: input, shape index: {}]   ;;  %s791_s6 = inlined_call_operand.hbm [shape: f32[8,128], index: 6, kind: output, shape index: {}]  }
   0x1   :  { %12 = vsyncpa [#allocation6], 0 }
   0x2   :  { %13 = vsyncpa [#allocation9], 0 }
   0x3   :  { %14 = vsyncpa [#allocation12], 0 }
   0x4   :  { %15 = vsyncpa [#allocation4], 0  ;;  %s649_s21 = smov [#allocation5]   ;;  %s485_s25 = scalar_lea.hbm %s786_s1, 1024 }
   0x5   :  { %s31_s22 = sshll.u32 %s649_s21, 4  ;;  %p486_p0 = scmp.ne.s32.totalorder %s786_s1, %s485_s25  ;;  %s32_s22 = int_to_ptr.vmem [resolvable:$true] %s31_s22 }
   0x6   :  { %p489_p1 = scmp.lt.u32.totalorder %s485_s25, %s786_s1 }
   0x8   :  { %p491_p2 = pnand %p489_p1, %p486_p0 }
   0xa   :  { %494 = shalt.err (!%p491_p2)
}
   0xb   :  { %s495_s30 = scalar_lea.vmem %s32_s22, 1024  ;;  %p500_p4 = scmp.lt.s32.totalorder %s32_s22, %s32_s22 }
   0xc   :  { %p496_p3 = scmp.ne.s32.totalorder %s32_s22, %s495_s30  ;;  %p501_p5 = scmp.lt.s32.totalorder %s495_s30, %s495_s30 }
   0xe   :  { %p502_p6 = por %p501_p5, %p500_p4 }
  0x10   :  { %p503_p7 = pnand %p502_p6, %p496_p3 }
  0x12   :  { %506 = shalt.err (!%p503_p7)
}
  0x13   :  { %s650_s7 = smov 64   ;;  %s651_s8 = smov 4  }
  0x14   :  { %37 = dma.hbm_to_vmem [thread:$0]  %s786_s1, 1024, %s32_s22, [#allocation6], %s650_s7, %s650_s7, %s651_s8  }
  0x15   :  { %s652_s11 = smov [#allocation8]   ;;  %s653_s13 = smov [#allocation2]  }
  0x16   :  { %s54_s12 = sshll.u32 %s652_s11, 4  ;;  %s22_s14 = sshll.u32 %s653_s13, 4  ;;  %s55_s12 = int_to_ptr.vmem [resolvable:$true] %s54_s12  ;;  %s23_s14 = int_to_ptr.vmem [resolvable:$true] %s22_s14 }
  0x17   :  { %s507_s17 = scalar_lea.hbm %s788_s3, 16 }
  0x18   :  { %p508_p8 = scmp.ne.s32.totalorder %s788_s3, %s507_s17  ;;  %p511_p9 = scmp.lt.u32.totalorder %s507_s17, %s788_s3 }
  0x1a   :  { %p513_p10 = pnand %p511_p9, %p508_p8 }
  0x1c   :  { %516 = shalt.err (!%p513_p10)
}
  0x1d   :  { %s517_s1 = scalar_lea.vmem %s55_s12, 16  ;;  %s521_s22 = scalar_lea.vmem %s55_s12, 32 }
  0x1e   :  { %p518_p11 = scmp.ne.s32.totalorder %s55_s12, %s517_s1  ;;  %p522_p12 = scmp.lt.s32.totalorder %s55_s12, %s55_s12 }
  0x1f   :  { %p523_p13 = scmp.lt.s32.totalorder %s521_s22, %s517_s1 }
  0x21   :  { %p524_p0 = por %p523_p13, %p522_p12 }
  0x23   :  { %p525_p1 = pnand %p524_p0, %p518_p11 }
  0x25   :  { %528 = shalt.err (!%p525_p1)
}
  0x26   :  { %57 = dma.hbm_to_vmem [thread:$0]  %s788_s3, 16, %s55_s12, [#allocation9]  }
  0x27   :  { %s529_s27 = scalar_lea.hbm %s785_s0, 64 }
  0x28   :  { %p530_p2 = scmp.ne.s32.totalorder %s785_s0, %s529_s27  ;;  %p533_p3 = scmp.lt.u32.totalorder %s529_s27, %s785_s0 }
  0x2a   :  { %p535_p4 = pnand %p533_p3, %p530_p2 }
  0x2c   :  { %538 = shalt.err (!%p535_p4)
}
  0x2d   :  { %s539_s10 = scalar_lea.vmem %s23_s14, 64  ;;  %p544_p6 = scmp.lt.s32.totalorder %s23_s14, %s23_s14 }
  0x2e   :  { %p540_p5 = scmp.ne.s32.totalorder %s23_s14, %s539_s10  ;;  %p545_p7 = scmp.lt.s32.totalorder %s539_s10, %s539_s10 }
  0x30   :  { %p546_p8 = por %p545_p7, %p544_p6 }
  0x32   :  { %p547_p9 = pnand %p546_p8, %p540_p5 }
  0x34   :  { %550 = shalt.err (!%p547_p9)
}
  0x35   :  { %25 = dma.hbm_to_vmem [thread:$0]  %s785_s0, 64, %s23_s14, [#allocation3]  }
  0x36   :  { %s654_s12 = smov [#allocation7]   ;;  %s655_s15 = smov [#allocation10]  }
  0x37   :  { %s44_s13 = sshll.u32 %s654_s12, 4  ;;  %s63_s16 = sshll.u32 %s655_s15, 4  ;;  %s45_s13 = int_to_ptr.vmem [resolvable:$true] %s44_s13  ;;  %s64_s16 = int_to_ptr.vmem [resolvable:$true] %s63_s16 }
  0x38   :  { %s551_s19 = scalar_lea.hbm %s787_s2, 16 }
  0x39   :  { %p552_p10 = scmp.ne.s32.totalorder %s787_s2, %s551_s19  ;;  %p555_p11 = scmp.lt.u32.totalorder %s551_s19, %s787_s2 }
  0x3b   :  { %p557_p12 = pnand %p555_p11, %p552_p10 }
  0x3d   :  { %560 = shalt.err (!%p557_p12)
}
  0x3e   :  { %s561_s0 = scalar_lea.vmem %s45_s13, 16  ;;  %s565_s14 = scalar_lea.vmem %s45_s13, 32 }
  0x3f   :  { %p562_p13 = scmp.ne.s32.totalorder %s45_s13, %s561_s0  ;;  %p566_p0 = scmp.lt.s32.totalorder %s45_s13, %s45_s13 }
  0x40   :  { %p567_p1 = scmp.lt.s32.totalorder %s565_s14, %s561_s0 }
  0x42   :  { %p568_p2 = por %p567_p1, %p566_p0 }
  0x44   :  { %p569_p3 = pnand %p568_p2, %p562_p13 }
  0x46   :  { %572 = shalt.err (!%p569_p3)
}
  0x47   :  { %47 = dma.hbm_to_vmem [thread:$0]  %s787_s2, 16, %s45_s13, [#allocation6]  }
  0x48   :  { %s573_s27 = scalar_lea.hbm %s789_s4, 1024 }
  0x49   :  { %p574_p4 = scmp.ne.s32.totalorder %s789_s4, %s573_s27  ;;  %p577_p5 = scmp.lt.u32.totalorder %s573_s27, %s789_s4 }
  0x4b   :  { %p579_p6 = pnand %p577_p5, %p574_p4 }
  0x4d   :  { %582 = shalt.err (!%p579_p6)
}
  0x4e   :  { %s583_s10 = scalar_lea.vmem %s64_s16, 1024  ;;  %p588_p8 = scmp.lt.s32.totalorder %s64_s16, %s64_s16 }
  0x4f   :  { %p584_p7 = scmp.ne.s32.totalorder %s64_s16, %s583_s10  ;;  %p589_p9 = scmp.lt.s32.totalorder %s583_s10, %s583_s10 }
  0x51   :  { %p590_p10 = por %p589_p9, %p588_p8 }
  0x53   :  { %p591_p11 = pnand %p590_p10, %p584_p7 }
  0x55   :  { %594 = shalt.err (!%p591_p11)
}
  0x56   :  { %69 = dma.hbm_to_vmem [thread:$0]  %s789_s4, 1024, %s64_s16, [#allocation9], %s650_s7, %s650_s7, %s651_s8  }
  0x57   :  { %s656_s11 = smov [#allocation11]   ;;  %s595_s17 = scalar_lea.hbm %s790_s5, 16 }
  0x58   :  { %s76_s12 = sshll.u32 %s656_s11, 4  ;;  %p596_p12 = scmp.ne.s32.totalorder %s790_s5, %s595_s17  ;;  %s77_s12 = int_to_ptr.vmem [resolvable:$true] %s76_s12 }
  0x59   :  { %p599_p13 = scmp.lt.u32.totalorder %s595_s17, %s790_s5 }
  0x5b   :  { %p601_p0 = pnand %p599_p13, %p596_p12 }
  0x5d   :  { %604 = shalt.err (!%p601_p0)
}
  0x5e   :  { %s605_s1 = scalar_lea.vmem %s77_s12, 16  ;;  %s609_s4 = scalar_lea.vmem %s77_s12, 32 }
  0x5f   :  { %p606_p1 = scmp.ne.s32.totalorder %s77_s12, %s605_s1  ;;  %p610_p2 = scmp.lt.s32.totalorder %s77_s12, %s77_s12 }
  0x60   :  { %p611_p3 = scmp.lt.s32.totalorder %s609_s4, %s605_s1 }
  0x62   :  { %p612_p4 = por %p611_p3, %p610_p2 }
  0x64   :  { %p613_p5 = pnand %p612_p4, %p606_p1 }
  0x66   :  { %616 = shalt.err (!%p613_p5)
}
  0x67   :  { %79 = dma.hbm_to_vmem [thread:$0]  %s790_s5, 16, %s77_s12, [#allocation12]  }
  0x68   :  { %639 = dma.done.wait [#allocation3], 64  }
  0x69   :  { %640 = vsyncadd [#allocation3], 4294967232 }
  0x6a   :  { %641 = dma.done.wait [#allocation6], 1040  }
  0x6b   :  { %642 = vsyncadd [#allocation6], 4294966256 }
  0x6c   :  { %643 = dma.done.wait [#allocation9], 1040  }
  0x6d   :  { %644 = vsyncadd [#allocation9], 4294966256 }
  0x6e   :  { %645 = dma.done.wait [#allocation12], 16  }
  0x6f   :  { %646 = vsyncadd [#allocation12], 4294967280  ;;  %v657_v0 = vmov 0.0   ;;  %vm658_vm0 = vmmov 0   ;;  %v467_v1 = vld [vmem:[#allocation5] sm:$0xff]   ;;  %v468_v2 = vld [vmem:[#allocation5 + $0x8] sm:$0xff]   ;;  %v242_v41 = vlaneseq }
  0x70   :  { %416 = vmatprep.subr.bf16.mxu0 %v657_v0  ;;  %432 = vmatprep.mubr.msk.bf16.mxu0 %vm658_vm0, %v657_v0  ;;  %v469_v3 = vld [vmem:[#allocation5 + $0x10] sm:$0xff]   ;;  %v470_v4 = vld [vmem:[#allocation5 + $0x18] sm:$0xff]   ;;  %v471_v5 = vld [vmem:[#allocation5 + $0x20] sm:$0xff]   ;;  %s659_s5 = smov [#allocation13]  }
  0x71   :  { %436 = vmatprep.subr.bf16.mxu1 %v657_v0  ;;  %452 = vmatprep.mubr.msk.bf16.mxu1 %vm658_vm0, %v657_v0  ;;  %v472_v6 = vld [vmem:[#allocation5 + $0x28] sm:$0xff]   ;;  %v473_v7 = vld [vmem:[#allocation5 + $0x30] sm:$0xff]   ;;  %v474_v8 = vld [vmem:[#allocation5 + $0x38] sm:$0xff]   ;;  %v243_v42 = vshrl.u32 %v242_v41, 7  ;;  %s369_s16 = sshll.u32 %s659_s5, 4  ;;  %s370_s16 = int_to_ptr.vmem [resolvable:$true] %s369_s16 }
  0x72   :  { %417 = vmatpush3.bf16.msra.mxu0 %v467_v1  ;;  %v111_v9 = vld [vmem:[#allocation2] sm:$0xf]  ;;  %v475_v10 = vld [vmem:[#allocation10] sm:$0xff]   ;;  %v476_v11 = vld [vmem:[#allocation10 + $0x8] sm:$0xff]   ;;  %s617_s22 = scalar_lea.vmem %s370_s16, 128  ;;  %p622_p7 = scmp.lt.s32.totalorder %s370_s16, %s370_s16 }
  0x73   :  { %418 = vmatprep.subr.bf16.mxu0 %v657_v0  ;;  %437 = vmatpush3.bf16.msra.mxu1 %v475_v10  ;;  %v477_v12 = vld [vmem:[#allocation10 + $0x10] sm:$0xff]   ;;  %v478_v13 = vld [vmem:[#allocation10 + $0x18] sm:$0xff]   ;;  %v479_v14 = vld [vmem:[#allocation10 + $0x20] sm:$0xff]   ;;  %v244_v44 = vsub.s32 0, %v243_v42  ;;  %p618_p6 = scmp.ne.s32.totalorder %s370_s16, %s617_s22  ;;  %p623_p8 = scmp.lt.s32.totalorder %s617_s22, %s617_s22 }
  0x74   :  { %438 = vmatprep.subr.bf16.mxu1 %v657_v0  ;;  %v480_v15 = vld [vmem:[#allocation10 + $0x28] sm:$0xff]   ;;  %v481_v16 = vld [vmem:[#allocation10 + $0x30] sm:$0xff]   ;;  %v482_v17 = vld [vmem:[#allocation10 + $0x38] sm:$0xff]  }
  0x75   :  { %v237_v43 = vld [vmem:[#allocation7] sm:$0x1]  ;;  %v239_v47 = vld [vmem:[#allocation8] sm:$0x1]  ;;  %v381_v56 = vld [vmem:[#allocation11] ss:$0 sm:$0xff]  ;;  %p624_p9 = por %p623_p8, %p622_p7 }
  0x76   :  { %419 = vmatpush3.bf16.msra.mxu0 %v468_v2 }
  0x77   :  { %420 = vmatprep.subr.bf16.mxu0 %v657_v0  ;;  %439 = vmatpush3.bf16.msra.mxu1 %v476_v11  ;;  %p625_p10 = pnand %p624_p9, %p618_p6 }
  0x78   :  { %440 = vmatprep.subr.bf16.mxu1 %v657_v0 }
  0x7a   :  { %421 = vmatpush3.bf16.msra.mxu0 %v469_v3 }
  0x7b   :  { %422 = vmatprep.subr.bf16.mxu0 %v657_v0  ;;  %441 = vmatpush3.bf16.msra.mxu1 %v477_v12 }
  0x7c   :  { %442 = vmatprep.subr.bf16.mxu1 %v657_v0 }
  0x7e   :  { %423 = vmatpush3.bf16.msra.mxu0 %v470_v4 }
  0x7f   :  { %424 = vmatprep.subr.bf16.mxu0 %v657_v0  ;;  %443 = vmatpush3.bf16.msra.mxu1 %v478_v13 }
  0x80   :  { %444 = vmatprep.subr.bf16.mxu1 %v657_v0 }
  0x82   :  { %425 = vmatpush3.bf16.msra.mxu0 %v471_v5 }
  0x83   :  { %426 = vmatprep.subr.bf16.mxu0 %v657_v0  ;;  %445 = vmatpush3.bf16.msra.mxu1 %v479_v14 }
  0x84   :  { %446 = vmatprep.subr.bf16.mxu1 %v657_v0 }
  0x86   :  { %427 = vmatpush3.bf16.msra.mxu0 %v472_v6 }
  0x87   :  { %428 = vmatprep.subr.bf16.mxu0 %v657_v0  ;;  %447 = vmatpush3.bf16.msra.mxu1 %v480_v15 }
  0x88   :  { %448 = vmatprep.subr.bf16.mxu1 %v657_v0 }
  0x8a   :  { %429 = vmatpush3.bf16.msra.mxu0 %v473_v7 }
  0x8b   :  { %430 = vmatprep.subr.bf16.mxu0 %v657_v0  ;;  %449 = vmatpush3.bf16.msra.mxu1 %v481_v16 }
  0x8c   :  { %450 = vmatprep.subr.bf16.mxu1 %v657_v0 }
  0x8e   :  { %431 = vmatpush3.bf16.msra.mxu0 %v474_v8 }
  0x8f   :  { %451 = vmatpush3.bf16.msra.mxu1 %v482_v17 }
  0x91   :  { %433 = vmatmul.mubr.bf16.vlgmr.msra.gmra.mrb[0].mxu0 %v111_v9 }
 0x164   :  { %v210_v18 = vpop.f32.mrb[0].mxu0 }
 0x165   :  { %v216_v19 = vrot.slane %v210_v18, 4  ;;  %v224_v20 = vmul.f32 %v210_v18, %v210_v18  ;;  %v434_v21 = vpop.f32.mrb[1].mxu0 }
 0x166   :  { %v213_v22 = vpop.f32.mrb[2].mxu0 }
 0x167   :  { %v217_v23 = vadd.f32 %v216_v19, %v210_v18  ;;  %v225_v24 = vrot.slane %v224_v20, 4  ;;  %v435_v25 = vpop.f32.mrb[3].mxu0 }
 0x169   :  { %v218_v26 = vrot.slane %v217_v23, 2  ;;  %v226_v27 = vadd.f32 %v225_v24, %v224_v20 }
 0x16b   :  { %v219_v28 = vadd.f32 %v218_v26, %v217_v23  ;;  %v227_v29 = vrot.slane %v226_v27, 2 }
 0x16d   :  { %v220_v30 = vrot.slane %v219_v28, 1  ;;  %v228_v31 = vadd.f32 %v227_v29, %v226_v27 }
 0x16f   :  { %v221_v32 = vadd.f32 %v220_v30, %v219_v28  ;;  %v229_v33 = vrot.slane %v228_v31, 1 }
 0x171   :  { %v223_v34 = vmul.f32 0.125, %v221_v32  ;;  %v230_v35 = vadd.f32 %v229_v33, %v228_v31 }
 0x173   :  { %v231_v36 = vmul.f32 0.125, %v230_v35  ;;  %v232_v37 = vmul.f32 %v223_v34, %v223_v34 }
 0x175   :  { %v233_v38 = vsub.f32 %v231_v36, %v232_v37 }
 0x177   :  { %v234_v39 = vmax.f32 %v233_v38, 0.0 }
 0x179   :  { %v235_v40 = vadd.f32 1e-05, %v234_v39 }
 0x17b   :  { %483 = vrsqrt.f32 %v235_v40 }
 0x185   :  { %v484_v45 = vpop.eup %483 }
 0x186   :  { %v238_v46 = vmul.f32 %v484_v45, %v237_v43 }
 0x188   :  { %v245_v48 = vrot.slane %v238_v46, %v244_v44  ;;  %v240_v49 = vmul.f32 %v238_v46, %v223_v34 }
 0x18a   :  { %v241_v50 = vsub.f32 %v239_v47, %v240_v49  ;;  %v246_v51 = vmul.f32 %v245_v48, %v210_v18 }
 0x18c   :  { %v251_v52 = vrot.slane %v241_v50, %v244_v44 }
 0x18e   :  { %v253_v53 = vadd.f32 %v251_v52, %v246_v51 }
 0x190   :  { %v254_v54 = vmax.f32 %v253_v53, 0.0 }
 0x192   :  { %v256_v55 = vpack.c.bf16 %v254_v54, %v254_v54 }
 0x194   :  { %453 = vmatmul.mubr.bf16.vlgmr.msra.gmra.mrb[0].mxu1 %v256_v55 }
 0x267   :  { %v355_v57 = vpop.f32.mrb[0].mxu1 }
 0x268   :  { %v361_v58 = vadd.f32 %v381_v56, %v355_v57  ;;  %v454_v59 = vpop.f32.mrb[1].mxu1 }
 0x269   :  { %v358_v60 = vpop.f32.mrb[2].mxu1 }
 0x26a   :  { %362 = vst [vmem:[#allocation13] sm:$0xff] %v361_v58  ;;  %v455_v61 = vpop.f32.mrb[3].mxu1 }
 0x26b   :  { %628 = shalt.err (!%p625_p10)
}
 0x26c   :  { %s629_s23 = scalar_lea.hbm %s791_s6, 128 }
 0x26d   :  { %p630_p11 = scmp.ne.s32.totalorder %s791_s6, %s629_s23  ;;  %p633_p12 = scmp.lt.u32.totalorder %s629_s23, %s791_s6 }
 0x26f   :  { %p635_p13 = pnand %p633_p12, %p630_p11 }
 0x271   :  { %638 = shalt.err (!%p635_p13)
}
 0x272   :  { %372 = dma.vmem_to_hbm [thread:$0]  %s370_s16, 128, %s791_s6, [#allocation4]  }
 0x273   :  { %647 = dma.done.wait [#allocation4], 128  }
 0x274   :  { %648 = vsyncadd [#allocation4], 4294967168 }
 0x275   :  { %376 = vsyncpa [#allocation3], 1 }
 0x276   :  { %377 = vsyncpa [#allocation6], 1 }
 0x277   :  { %378 = vsyncpa [#allocation9], 1 }
 0x278   :  { %379 = vsyncpa [#allocation12], 1 }
 0x279   :  { %380 = vsyncpa [#allocation4], 1 }

</bundles_post_ra>
